<compile_context>
chip_gen: v6e
topology: v6e:2x2x1
jax: 0.10.0
libtpu: 0.0.40
codegen_flags: <defaults>
</compile_context>

<pallas_src>
import functools

import jax
import jax.numpy as jnp
import numpy as np
from jax.experimental import pallas as pl
from jax.experimental.pallas import tpu as pltpu


# ----------------------------------------------------------------------------
# Fused kernel: embedding-row gather + n_layers GRU steps.
#   scalar prefetch : tok_ref  (1,)  int32   token index (SMEM)
#   inputs (VMEM, resident across the whole grid):
#       emb_ref [vocab, H] f32, h0_ref [1, H] f32,
#       wih_ref [H, 3H] bf16, whh_ref [H, 3H] bf16,
#       brz_ref [1, 2H] f32 (b_ih+b_hh folded for r,z), bin_ref/bhn_ref [1, H] f32
#   output : out_ref [1, H] f32
#   scratch: h_scr   [1, H] f32  (hidden state carried across layer iterations)
# ----------------------------------------------------------------------------
def encoder_gru_kernel(tok_ref, emb_ref, h0_ref, wih_ref, whh_ref,
                       brz_ref, bin_ref, bhn_ref, out_ref, h_scr):
    layer = pl.program_id(0)
    H = out_ref.shape[-1]

    @pl.when(layer == 0)
    def _():
        h_scr[...] = h0_ref[...]

    h = h_scr[...]                                       # [1, H] f32

    # Layer-0 input is the embedded token; layers > 0 take the previous layer's
    # output, which for a single-step GRU equals the carried hidden state.
    emb_row = emb_ref[pl.ds(tok_ref[0], 1), :]           # [1, H] f32
    x = jnp.where(layer == 0, emb_row, h)

    # bf16 operands for the MXU, f32 accumulation; gate math stays f32.
    gi = jnp.dot(x.astype(jnp.bfloat16), wih_ref[...],
                 preferred_element_type=jnp.float32)     # [1, 3H]
    gh = jnp.dot(h.astype(jnp.bfloat16), whh_ref[...],
                 preferred_element_type=jnp.float32)     # [1, 3H]

    # Lane-aligned gate slices (H is a multiple of 128).
    rz = jax.nn.sigmoid(gi[:, :2 * H] + gh[:, :2 * H] + brz_ref[...])
    r = rz[:, :H]
    z = rz[:, H:]
    n = jnp.tanh(gi[:, 2 * H:] + bin_ref[...] + r * (gh[:, 2 * H:] + bhn_ref[...]))
    h_new = (1.0 - z) * n + z * h

    h_scr[...] = h_new
    out_ref[...] = h_new.astype(out_ref.dtype)           # final iteration's value wins


# ----------------------------------------------------------------------------
# EncoderRNN forward (matches the PyTorch module semantics)
# ----------------------------------------------------------------------------
def encoder_rnn_forward(params, token, hidden, n_layers=1):
    """
    token : int scalar (or shape-(1,) int32) token index
    hidden: [1, 1, H]
    returns (output [1,1,H], hidden [1,1,H])   (equal values, as for a 1-step GRU)
    """
    emb = params["embedding"]
    vocab, H = emb.shape
    H3 = 3 * H

    tok = jnp.asarray(token, jnp.int32).reshape((1,))
    h0 = hidden.reshape(1, H).astype(jnp.float32)

    grid_spec = pltpu.PrefetchScalarGridSpec(
        num_scalar_prefetch=1,
        grid=(n_layers,),
        in_specs=[
            # constant index_maps -> every operand is loaded into VMEM once and
            # stays resident for all n_layers iterations (no per-step re-DMA).
            pl.BlockSpec((vocab, H), lambda l, tok: (0, 0)),   # embedding table
            pl.BlockSpec((1, H),     lambda l, tok: (0, 0)),   # h0
            pl.BlockSpec((H, H3),    lambda l, tok: (0, 0)),   # W_ih^T (bf16)
            pl.BlockSpec((H, H3),    lambda l, tok: (0, 0)),   # W_hh^T (bf16)
            pl.BlockSpec((1, 2 * H), lambda l, tok: (0, 0)),   # b_rz (folded)
            pl.BlockSpec((1, H),     lambda l, tok: (0, 0)),   # b_in
            pl.BlockSpec((1, H),     lambda l, tok: (0, 0)),   # b_hn
        ],
        out_specs=pl.BlockSpec((1, H), lambda l, tok: (0, 0)),
        scratch_shapes=[pltpu.VMEM((1, H), jnp.float32)],      # carried hidden state
    )

    h_new = pl.pallas_call(
        encoder_gru_kernel,
        out_shape=jax.ShapeDtypeStruct((1, H), jnp.float32),
        grid_spec=grid_spec,
        compiler_params=pltpu.CompilerParams(
            dimension_semantics=("arbitrary",),   # sequential carried dependency
        ),
    )(tok, emb, h0,
      params["w_ih_t"], params["w_hh_t"],
      params["b_rz"], params["b_in"], params["b_hn"])

    out = h_new.reshape(1, 1, H)
    return out, out


# ----------------------------------------------------------------------------
# Parameters (PyTorch-like uniform init) and a pure-JAX reference for checking
# ----------------------------------------------------------------------------
def init_params(key, input_size, hidden_size):
    k_emb, k_wi, k_wh, k_bi, k_bh = jax.random.split(key, 5)
    H = hidden_size
    bound = 1.0 / jnp.sqrt(jnp.float32(H))
    w_ih_t = jax.random.uniform(k_wi, (H, 3 * H), jnp.float32, -bound, bound)
    w_hh_t = jax.random.uniform(k_wh, (H, 3 * H), jnp.float32, -bound, bound)
    b_ih = jax.random.uniform(k_bi, (1, 3 * H), jnp.float32, -bound, bound)
    b_hh = jax.random.uniform(k_bh, (1, 3 * H), jnp.float32, -bound, bound)
    return {
        "embedding": jax.random.normal(k_emb, (input_size, H), jnp.float32),
        # stored pre-transposed [H, 3H], gate order [r, z, n]; bf16 for the MXU
        "w_ih_t": w_ih_t.astype(jnp.bfloat16),
        "w_hh_t": w_hh_t.astype(jnp.bfloat16),
        # r/z biases folded on the host; n-gate biases kept separate (r * (h_n + b_hn))
        "b_rz": b_ih[:, :2 * H] + b_hh[:, :2 * H],
        "b_in": b_ih[:, 2 * H:],
        "b_hn": b_hh[:, 2 * H:],
    }


def encoder_rnn_reference(params, token, hidden, n_layers=1):
    """Pure-JAX reference with the same bf16-weight numerics."""
    H = params["embedding"].shape[-1]
    wih = params["w_ih_t"].astype(jnp.float32)
    whh = params["w_hh_t"].astype(jnp.float32)
    x = params["embedding"][jnp.asarray(token, jnp.int32)].reshape(1, H)
    h = hidden.reshape(1, H).astype(jnp.float32)
    for _ in range(n_layers):
        xb = x.astype(jnp.bfloat16).astype(jnp.float32)
        hb = h.astype(jnp.bfloat16).astype(jnp.float32)
        gi = jnp.dot(xb, wih)
        gh = jnp.dot(hb, whh)
        rz = jax.nn.sigmoid(gi[:, :2 * H] + gh[:, :2 * H] + params["b_rz"])
        r, z = rz[:, :H], rz[:, H:]
        n = jnp.tanh(gi[:, 2 * H:] + params["b_in"] + r * (gh[:, 2 * H:] + params["b_hn"]))
        h = (1.0 - z) * n + z * h
        x = h
    return h.reshape(1, 1, H), h.reshape(1, 1, H)


if __name__ == "__main__":
    input_size = 16     # vocab size
    hidden_size = 128   # multiple of 128 -> lane-aligned gates & lane-dense stores
    n_layers = 2        # exercises the fused layer grid (weights loaded once)

    key = jax.random.PRNGKey(0)
    params = init_params(key, input_size, hidden_size)

    token = jnp.array([5], dtype=jnp.int32)                 # single input token
    hidden0 = jnp.zeros((1, 1, hidden_size), jnp.float32)   # init_hidden()

    fwd = jax.jit(functools.partial(encoder_rnn_forward, n_layers=n_layers))
    output, hidden = fwd(params, token, hidden0)
    output = jax.block_until_ready(output)
    hidden = jax.block_until_ready(hidden)

    assert output.shape == (1, 1, hidden_size)
    assert hidden.shape == (1, 1, hidden_size)

    # numerical check against the pure-JAX reference
    ref_out, ref_hid = encoder_rnn_reference(params, token, hidden0, n_layers=n_layers)
    np.testing.assert_allclose(np.asarray(output), np.asarray(ref_out), rtol=2e-2, atol=2e-2)
    np.testing.assert_allclose(np.asarray(hidden), np.asarray(ref_hid), rtol=2e-2, atol=2e-2)

    print("KERNEL_OK")
</pallas_src>

<mosaic_0001>
module attributes {stable_mosaic.version = 11 : i64} {
  func.func @encoder_gru_kernel(%arg0: i32, %arg1: memref<1xi32, #tpu.memory_space<smem>>, %arg2: memref<16x128xf32, #tpu.memory_space<vmem>>, %arg3: memref<1x128xf32, #tpu.memory_space<vmem>>, %arg4: memref<128x384xbf16, #tpu.memory_space<vmem>>, %arg5: memref<128x384xbf16, #tpu.memory_space<vmem>>, %arg6: memref<1x256xf32, #tpu.memory_space<vmem>>, %arg7: memref<1x128xf32, #tpu.memory_space<vmem>>, %arg8: memref<1x128xf32, #tpu.memory_space<vmem>>, %arg9: memref<1x128xf32, #tpu.memory_space<vmem>>, %arg10: memref<1x128xf32, #tpu.memory_space<vmem>>) attributes {dimension_semantics = [#tpu.dimension_semantics<arbitrary>], iteration_bounds = array<i64: 2>, scalar_prefetch = 1 : i64, scratch_operands = 1 : i64, tpu.core_type = #tpu.core_type<tc>, window_params = [{pipeline_mode = #tpu.pipeline_mode<synchronous>, transform_indices = @transform_0, window_bounds = array<i64: 16, 128>}, {pipeline_mode = #tpu.pipeline_mode<synchronous>, transform_indices = @transform_1, window_bounds = array<i64: 1, 128>}, {pipeline_mode = #tpu.pipeline_mode<synchronous>, transform_indices = @transform_2, window_bounds = array<i64: 128, 384>}, {pipeline_mode = #tpu.pipeline_mode<synchronous>, transform_indices = @transform_3, window_bounds = array<i64: 128, 384>}, {pipeline_mode = #tpu.pipeline_mode<synchronous>, transform_indices = @transform_4, window_bounds = array<i64: 1, 256>}, {pipeline_mode = #tpu.pipeline_mode<synchronous>, transform_indices = @transform_5, window_bounds = array<i64: 1, 128>}, {pipeline_mode = #tpu.pipeline_mode<synchronous>, transform_indices = @transform_6, window_bounds = array<i64: 1, 128>}, {pipeline_mode = #tpu.pipeline_mode<synchronous>, transform_indices = @transform_7, window_bounds = array<i64: 1, 128>}]} {
    %c0_i32 = arith.constant 0 : i32
    %0 = arith.cmpi eq, %arg0, %c0_i32 : i32
    %1 = arith.extui %0 : i1 to i32
    %c0_i32_0 = arith.constant 0 : i32
    %2 = arith.cmpi ne, %1, %c0_i32_0 : i32
    scf.if %2 {
      %c0_22 = arith.constant 0 : index
      %c0_23 = arith.constant 0 : index
      %43 = vector.load %arg3[%c0_22, %c0_23] : memref<1x128xf32, #tpu.memory_space<vmem>>, vector<1x128xf32>
      %c0_24 = arith.constant 0 : index
      %c0_25 = arith.constant 0 : index
      %44 = vector.load %arg10[%c0_24, %c0_25] : memref<1x128xf32, #tpu.memory_space<vmem>>, vector<1x128xf32>
      tpu.vector_store %arg10[%c0_24, %c0_25], %43 {strides = array<i32>} : memref<1x128xf32, #tpu.memory_space<vmem>>, vector<1x128xf32>,
    } else {
    }
    %c0 = arith.constant 0 : index
    %c0_1 = arith.constant 0 : index
    %3 = vector.load %arg10[%c0, %c0_1] : memref<1x128xf32, #tpu.memory_space<vmem>>, vector<1x128xf32>
    %c0_2 = arith.constant 0 : index
    %4 = memref.load %arg1[%c0_2] : memref<1xi32, #tpu.memory_space<smem>>
    %5 = arith.index_cast %4 : i32 to index
    %c0_3 = arith.constant 0 : index
    %6 = vector.load %arg2[%5, %c0_3] : memref<16x128xf32, #tpu.memory_space<vmem>>, vector<1x128xf32>
    %c0_i32_4 = arith.constant 0 : i32
    %7 = arith.cmpi eq, %arg0, %c0_i32_4 : i32
    %8 = arith.select %7, %6, %3 : vector<1x128xf32>
    %9 = arith.truncf %8 : vector<1x128xf32> to vector<1x128xbf16>
    %c0_5 = arith.constant 0 : index
    %c0_6 = arith.constant 0 : index
    %10 = vector.load %arg4[%c0_5, %c0_6] : memref<128x384xbf16, #tpu.memory_space<vmem>>, vector<128x384xbf16>
    %cst = arith.constant dense<0.000000e+00> : vector<1x384xf32>
    %11 = tpu.matmul %9, %10, %cst {dimension_numbers = #tpu.dot_dimension_numbers<[1], [0], [0], [1], [0, 0, 1, 1], [], []>} : vector<1x128xbf16>, vector<128x384xbf16>, vector<1x384xf32> -> vector<1x384xf32>
    %12 = arith.truncf %3 : vector<1x128xf32> to vector<1x128xbf16>
    %c0_7 = arith.constant 0 : index
    %c0_8 = arith.constant 0 : index
    %13 = vector.load %arg5[%c0_7, %c0_8] : memref<128x384xbf16, #tpu.memory_space<vmem>>, vector<128x384xbf16>
    %cst_9 = arith.constant dense<0.000000e+00> : vector<1x384xf32>
    %14 = tpu.matmul %12, %13, %cst_9 {dimension_numbers = #tpu.dot_dimension_numbers<[1], [0], [0], [1], [0, 0, 1, 1], [], []>} : vector<1x128xbf16>, vector<128x384xbf16>, vector<1x384xf32> -> vector<1x384xf32>
    %15 = vector.extract_strided_slice %11 {offsets = [0, 0], sizes = [1, 256], strides = [1, 1]} : vector<1x384xf32> to vector<1x256xf32>
    %16 = vector.extract_strided_slice %14 {offsets = [0, 0], sizes = [1, 256], strides = [1, 1]} : vector<1x384xf32> to vector<1x256xf32>
    %17 = arith.addf %15, %16 : vector<1x256xf32>
    %c0_10 = arith.constant 0 : index
    %c0_11 = arith.constant 0 : index
    %18 = vector.load %arg6[%c0_10, %c0_11] : memref<1x256xf32, #tpu.memory_space<vmem>>, vector<1x256xf32>
    %19 = arith.addf %17, %18 : vector<1x256xf32>
    %20 = arith.negf %19 : vector<1x256xf32>
    %21 = math.exp %20 : vector<1x256xf32>
    %cst_12 = arith.constant 1.000000e+00 : f32
    %22 = vector.broadcast %cst_12 : f32 to vector<1x256xf32>
    %23 = arith.addf %22, %21 : vector<1x256xf32>
    %24 = arith.divf %22, %23 : vector<1x256xf32>
    %25 = vector.extract_strided_slice %24 {offsets = [0, 0], sizes = [1, 128], strides = [1, 1]} : vector<1x256xf32> to vector<1x128xf32>
    %26 = vector.extract_strided_slice %24 {offsets = [0, 128], sizes = [1, 128], strides = [1, 1]} : vector<1x256xf32> to vector<1x128xf32>
    %27 = vector.extract_strided_slice %11 {offsets = [0, 256], sizes = [1, 128], strides = [1, 1]} : vector<1x384xf32> to vector<1x128xf32>
    %c0_13 = arith.constant 0 : index
    %c0_14 = arith.constant 0 : index
    %28 = vector.load %arg7[%c0_13, %c0_14] : memref<1x128xf32, #tpu.memory_space<vmem>>, vector<1x128xf32>
    %29 = arith.addf %27, %28 : vector<1x128xf32>
    %30 = vector.extract_strided_slice %14 {offsets = [0, 256], sizes = [1, 128], strides = [1, 1]} : vector<1x384xf32> to vector<1x128xf32>
    %c0_15 = arith.constant 0 : index
    %c0_16 = arith.constant 0 : index
    %31 = vector.load %arg8[%c0_15, %c0_16] : memref<1x128xf32, #tpu.memory_space<vmem>>, vector<1x128xf32>
    %32 = arith.addf %30, %31 : vector<1x128xf32>
    %33 = arith.mulf %25, %32 : vector<1x128xf32>
    %34 = arith.addf %29, %33 : vector<1x128xf32>
    %35 = math.tanh %34 : vector<1x128xf32>
    %cst_17 = arith.constant 1.000000e+00 : f32
    %36 = vector.broadcast %cst_17 : f32 to vector<1x128xf32>
    %37 = arith.subf %36, %26 : vector<1x128xf32>
    %38 = arith.mulf %37, %35 : vector<1x128xf32>
    %39 = arith.mulf %26, %3 : vector<1x128xf32>
    %40 = arith.addf %38, %39 : vector<1x128xf32>
    %c0_18 = arith.constant 0 : index
    %c0_19 = arith.constant 0 : index
    %41 = vector.load %arg10[%c0_18, %c0_19] : memref<1x128xf32, #tpu.memory_space<vmem>>, vector<1x128xf32>
    tpu.vector_store %arg10[%c0_18, %c0_19], %40 {strides = array<i32>} : memref<1x128xf32, #tpu.memory_space<vmem>>, vector<1x128xf32>,
    %c0_20 = arith.constant 0 : index
    %c0_21 = arith.constant 0 : index
    %42 = vector.load %arg9[%c0_20, %c0_21] : memref<1x128xf32, #tpu.memory_space<vmem>>, vector<1x128xf32>
    tpu.vector_store %arg9[%c0_20, %c0_21], %40 {strides = array<i32>} : memref<1x128xf32, #tpu.memory_space<vmem>>, vector<1x128xf32>,
    return
  }
  func.func @transform_0(%arg0: i32, %arg1: memref<1xi32, #tpu.memory_space<smem>>) -> (i32, i32) {
    %c0_i32 = arith.constant 0 : i32
    %c0_i32_0 = arith.constant 0 : i32
    %c0_i32_1 = arith.constant 0 : i32
    return %c0_i32, %c0_i32_0 : i32, i32
  }
  func.func @transform_1(%arg0: i32, %arg1: memref<1xi32, #tpu.memory_space<smem>>) -> (i32, i32) {
    %c0_i32 = arith.constant 0 : i32
    %c0_i32_0 = arith.constant 0 : i32
    %c0_i32_1 = arith.constant 0 : i32
    return %c0_i32, %c0_i32_0 : i32, i32
  }
  func.func @transform_2(%arg0: i32, %arg1: memref<1xi32, #tpu.memory_space<smem>>) -> (i32, i32) {
    %c0_i32 = arith.constant 0 : i32
    %c0_i32_0 = arith.constant 0 : i32
    %c0_i32_1 = arith.constant 0 : i32
    return %c0_i32, %c0_i32_0 : i32, i32
  }
  func.func @transform_3(%arg0: i32, %arg1: memref<1xi32, #tpu.memory_space<smem>>) -> (i32, i32) {
    %c0_i32 = arith.constant 0 : i32
    %c0_i32_0 = arith.constant 0 : i32
    %c0_i32_1 = arith.constant 0 : i32
    return %c0_i32, %c0_i32_0 : i32, i32
  }
  func.func @transform_4(%arg0: i32, %arg1: memref<1xi32, #tpu.memory_space<smem>>) -> (i32, i32) {
    %c0_i32 = arith.constant 0 : i32
    %c0_i32_0 = arith.constant 0 : i32
    %c0_i32_1 = arith.constant 0 : i32
    return %c0_i32, %c0_i32_0 : i32, i32
  }
  func.func @transform_5(%arg0: i32, %arg1: memref<1xi32, #tpu.memory_space<smem>>) -> (i32, i32) {
    %c0_i32 = arith.constant 0 : i32
    %c0_i32_0 = arith.constant 0 : i32
    %c0_i32_1 = arith.constant 0 : i32
    return %c0_i32, %c0_i32_0 : i32, i32
  }
  func.func @transform_6(%arg0: i32, %arg1: memref<1xi32, #tpu.memory_space<smem>>) -> (i32, i32) {
    %c0_i32 = arith.constant 0 : i32
    %c0_i32_0 = arith.constant 0 : i32
    %c0_i32_1 = arith.constant 0 : i32
    return %c0_i32, %c0_i32_0 : i32, i32
  }
  func.func @transform_7(%arg0: i32, %arg1: memref<1xi32, #tpu.memory_space<smem>>) -> (i32, i32) {
    %c0_i32 = arith.constant 0 : i32
    %c0_i32_0 = arith.constant 0 : i32
    %c0_i32_1 = arith.constant 0 : i32
    return %c0_i32, %c0_i32_0 : i32, i32
  }
}

</mosaic_0001>

<bundles_post_ra>
// kernel: encoder_rnn_forward.1
= control target key start
LH: loop header
LB: loop body
LE: loop exit
PB: predicated region body
PF: predicated region fallthrough
CT: control target
= control target key end

     0   :  { %s1475_s0 = inlined_call_operand.<no memory space> [shape: s32[1], index: 0, kind: input, shape index: {}]   ;;  %s1476_s1 = inlined_call_operand.hbm [shape: f32[16,128], index: 1, kind: input, shape index: {}]   ;;  %s1477_s2 = inlined_call_operand.vmem [shape: f32[1,128], index: 2, kind: input, shape index: {}]   ;;  %s1478_s3 = inlined_call_operand.hbm [shape: bf16[128,384], index: 3, kind: input, shape index: {}]   ;;  %s1479_s4 = inlined_call_operand.hbm [shape: bf16[128,384], index: 4, kind: input, shape index: {}]   ;;  %s1480_s5 = inlined_call_operand.vmem [shape: f32[1,256], index: 5, kind: input, shape index: {}]   ;;  %s1481_s6 = inlined_call_operand.vmem [shape: f32[1,128], index: 6, kind: input, shape index: {}]   ;;  %s1482_s7 = inlined_call_operand.hbm [shape: f32[1,128], index: 7, kind: input, shape index: {}]   ;;  %s1483_s8 = inlined_call_operand.vmem [shape: f32[1,128], index: 8, kind: output, shape index: {}]  }
   0x1   :  { %13 = sst [smem:[#allocation4]] %s1475_s0 }
   0x2   :  { %14 = vsyncpa [#allocation6], 0 }
   0x3   :  { %15 = vsyncpa [#allocation8], 0 }
   0x4   :  { %16 = vsyncpa [#allocation11], 0  ;;  %s1336_s29 = smov 0  }
   0x5 LB: > { %s1277_s30 = smov [#allocation7]   ;;  %s901_s10 = sadd.s32 4294967295, %s1275_s29   ;;  %s1275_s29 = sphi %s1336_s29, %s22_s29  }
   0x6   : > { %s223_s9 = sshll.u32 %s1277_s30, 4  ;;  %p902_p0 = scmp.ge.s32.totalorder %s1275_s29, 1  ;;  %s224_s9 = int_to_ptr.vmem [resolvable:$true] %s223_s9 }
   0x7   : > { %p195_p1 = scmp.lt.s32.totalorder %s1275_s29, 3  ;;  %p1344_p2 = scmp.ne.s32.totalorder %s901_s10, 0 }
   0x8   : > { %p1348_p3 = scmp.eq.s32.totalorder %s901_s10, 0  ;;  %s1278_s13 = smov [#allocation5]  }
   0x9   : > { %p1352_p4 = pnand %p902_p0, %p195_p1  ;;  %s207_s14 = sshll.u32 %s1278_s13, 4  ;;  %s1358_s14 = int_to_ptr.vmem [resolvable:$true] %s207_s14 }
   0xa   : > { %s1279_s16 = smov [#allocation9]   ;;  %s1164_s18 = scalar_lea.vmem %s224_s9, 3072 }
   0xb   : > { %p1039_p5 = pneg %p1352_p4  ;;  %s1366_s17 = sshll.u32 %s1279_s16, 4  ;;  %s237_s17 = int_to_ptr.vmem [resolvable:$true] %s1366_s17 }
   0xc   : > { %p1165_p8 = scmp.ne.s32.totalorder %s224_s9, %s1164_s18  ;;  %p1172_p11 = scmp.lt.s32.totalorder %s224_s9, %s224_s9 }
   0xd   : > { %p1362_p6 = pnand %p1348_p3, %p1039_p5  ;;  %p1173_p12 = scmp.lt.s32.totalorder %s1164_s18, %s1164_s18 }
   0xf   : > { %p1155_p7 = pneg %p1362_p6  ;;  %p1174_p13 = por %p1173_p12, %p1172_p11 }
  0x11   : > { %p1167_p9 = pnand %p1165_p8, %p1155_p7 }
  0x13   : > { %p1168_p10 = pneg %p1167_p9 }
  0x15   : > { %p1175_p0 = pnand %p1174_p13, %p1168_p10 }
  0x17   : > { %1178 = shalt.err (!%p1175_p0)
}
  0x18   : > { %s1280_s19 = smov 192   ;;  %s1281_s20 = smov 12  }
  0x19   : > { %1045 = dma.hbm_to_vmem [thread:$0]  (!%p1362_p6), %s1478_s3, 3072, %s224_s9, [#allocation8], %s1280_s19, %s1280_s19, %s1281_s20  }
  0x1a   : > { %s1190_s23 = scalar_lea.vmem %s1358_s14, 256  ;;  %p1198_p9 = scmp.lt.s32.totalorder %s1358_s14, %s1358_s14 }
  0x1b   : > { %p1191_p1 = scmp.ne.s32.totalorder %s1358_s14, %s1190_s23  ;;  %p1199_p10 = scmp.lt.s32.totalorder %s1190_s23, %s1190_s23 }
  0x1d   : > { %p1193_p5 = pnand %p1191_p1, %p1155_p7  ;;  %p1200_p11 = por %p1199_p10, %p1198_p9 }
  0x1f   : > { %p1194_p8 = pneg %p1193_p5 }
  0x21   : > { %p1201_p12 = pnand %p1200_p11, %p1194_p8 }
  0x23   : > { %1204 = shalt.err (!%p1201_p12)
}
  0x24   : > { %s1282_s24 = smov 128   ;;  %s1283_s25 = smov 8  }
  0x25   : > { %1042 = dma.hbm_to_vmem [thread:$0]  (!%p1362_p6), %s1476_s1, 256, %s1358_s14, [#allocation6], %s1282_s24, %s1282_s24, %s1283_s25  }
  0x26   : > { %s1284_s28 = smov [#allocation10]   ;;  %s1216_s9 = scalar_lea.vmem %s237_s17, 3072 }
  0x27   : > { %s256_s30 = sshll.u32 %s1284_s28, 4  ;;  %p1217_p13 = scmp.ne.s32.totalorder %s237_s17, %s1216_s9  ;;  %s257_s30 = int_to_ptr.vmem [resolvable:$true] %s256_s30 }
  0x28   : > { %p1224_p5 = scmp.lt.s32.totalorder %s237_s17, %s237_s17  ;;  %p1225_p8 = scmp.lt.s32.totalorder %s1216_s9, %s1216_s9 }
  0x29   : > { %p1219_p0 = pnand %p1217_p13, %p1155_p7 }
  0x2a   : > { %p1226_p9 = por %p1225_p8, %p1224_p5 }
  0x2b   : > { %p1220_p1 = pneg %p1219_p0 }
  0x2d   : > { %p1227_p10 = pnand %p1226_p9, %p1220_p1 }
  0x2f   : > { %1230 = shalt.err (!%p1227_p10)
}
  0x30   : > { %1048 = dma.hbm_to_vmem [thread:$0]  (!%p1362_p6), %s1479_s4, 3072, %s237_s17, [#allocation8], %s1280_s19, %s1280_s19, %s1281_s20  }
  0x31   : > { %s1242_s14 = scalar_lea.vmem %s257_s30, 16  ;;  %s1249_s16 = scalar_lea.vmem %s257_s30, 32 }
  0x32   : > { %p1243_p11 = scmp.ne.s32.totalorder %s257_s30, %s1242_s14  ;;  %p1250_p0 = scmp.lt.s32.totalorder %s257_s30, %s257_s30 }
  0x33   : > { %p1251_p1 = scmp.lt.s32.totalorder %s1249_s16, %s1242_s14 }
  0x34   : > { %p1245_p12 = pnand %p1243_p11, %p1155_p7 }
  0x35   : > { %p1252_p5 = por %p1251_p1, %p1250_p0 }
  0x36   : > { %p1246_p13 = pneg %p1245_p12 }
  0x38   : > { %p1253_p8 = pnand %p1252_p5, %p1246_p13 }
  0x3a   : > { %1256 = shalt.err (!%p1253_p8)
}
  0x3b   : > { %1051 = dma.hbm_to_vmem [thread:$0]  (!%p1362_p6), %s1482_s7, 16, %s257_s30, [#allocation11]  }
  0x3c   : > { %269 = sbr.rel (%p1352_p4) target bundleno = 395 (0x18b), region = 48 }
  0x41   : > { %1262 = dma.done.wait (%p1348_p3), [#allocation6], 256  }
  0x42   : > { %1264 = vsyncadd (%p1348_p3), [#allocation6], 4294967040 }
  0x43   : > { %1266 = dma.done.wait (%p1348_p3), [#allocation8], 6144  }
  0x44   : > { %1268 = vsyncadd (%p1348_p3), [#allocation8], 4294961152 }
  0x45   : > { %1270 = dma.done.wait (%p1348_p3), [#allocation11], 16  }
  0x46   : > { %1272 = vsyncadd (%p1348_p3), [#allocation11], 4294967280  ;;  %307 = sbr.rel (%p1344_p2) target bundleno = 77 (0x4d), region = 68 }
  0x4b   : > { %v308_v0 = vld [vmem:[%s1477_s2] sm:$0x1] }
  0x4c   : > { %309 = vst [vmem:[#allocation2] sm:$0x1] %v308_v0 }
  0x4d PF: > { %v1079_v1 = vld [vmem:[#allocation7 + $0xac] ss:$12 sps:$4 sm:$0xff]   ;;  %v1081_v2 = vld [vmem:[#allocation7 + $0xa8] ss:$12 sps:$4 sm:$0xff]   ;;  %v1285_v3 = vmov 0.0   ;;  %v1286_v4 = vmov 0  }
  0x4e   : > { %983 = vmatprep.subr.bf16.mxu1 %v1285_v3  ;;  %511 = vmatprep.mubr.bf16.mxu0 %v1286_v4  ;;  %v1082_v5 = vld [vmem:[#allocation7 + $0x94] ss:$12 sps:$4 sm:$0xff]   ;;  %v1084_v6 = vld [vmem:[#allocation7 + $0x90] ss:$12 sps:$4 sm:$0xff]   ;;  %vm1287_vm0 = vmmov 0   ;;  %s311_s0 = sld [smem:[#allocation4]] }
  0x4f   : > { %479 = vmatprep.subr.bf16.mxu0 %v1079_v1  ;;  %999 = vmatprep.mubr.msk.bf16.mxu1 %vm1287_vm0, %v1285_v3  ;;  %v1085_v7 = vld [vmem:[#allocation7 + $0x7c] ss:$12 sps:$4 sm:$0xff]   ;;  %v1087_v8 = vld [vmem:[#allocation7 + $0x78] ss:$12 sps:$4 sm:$0xff]   ;;  %v1090_v10 = vld [vmem:[#allocation7 + $0x60] ss:$12 sps:$4 sm:$0xff]   ;;  %v806_v1 = vlaneseq }
  0x50   : > { %480 = vmatpush1.bf16.msra.mxu0 %v1081_v2  ;;  %v1088_v9 = vld [vmem:[#allocation7 + $0x64] ss:$12 sps:$4 sm:$0xff]   ;;  %v1091_v12 = vld [vmem:[#allocation7 + $0x4c] ss:$12 sps:$4 sm:$0xff]   ;;  %v1093_v14 = vld [vmem:[#allocation7 + $0x48] ss:$12 sps:$4 sm:$0xff]  }
  0x51   : > { %481 = vmatprep.subr.bf16.mxu0 %v1082_v5  ;;  %v1103_v11 = vld [vmem:[#allocation7 + $0xb0] ss:$12 sps:$4 sm:$0xff]   ;;  %v1107_v13 = vld [vmem:[#allocation7 + $0x98] ss:$12 sps:$4 sm:$0xff]   ;;  %v1094_v15 = vld [vmem:[#allocation7 + $0x34] ss:$12 sps:$4 sm:$0xff]  }
  0x52   : > { %984 = vmatpush3.bf16.msra.mxu1 %v1103_v11  ;;  %s314_s17 = scalar_select %p1348_p3, 1, 0  ;;  %v1111_v16 = vld [vmem:[#allocation7 + $0x80] ss:$12 sps:$4 sm:$0xff]   ;;  %v1096_v17 = vld [vmem:[#allocation7 + $0x30] ss:$12 sps:$4 sm:$0xff]  }
  0x53   : > { %985 = vmatprep.subr.bf16.mxu1 %v1285_v3  ;;  %v1097_v18 = vld [vmem:[#allocation7 + $0x1c] ss:$12 sps:$4 sm:$0xff]   ;;  %v1099_v21 = vld [vmem:[#allocation7 + $0x18] ss:$12 sps:$4 sm:$0xff]   ;;  %v1442_v23 = vld [vmem:[#allocation2] sm:$0x1] }
  0x54   : > { %482 = vmatpush1.bf16.msra.mxu0 %v1084_v6  ;;  %v315_v19 = vstv %s314_s17  ;;  %v1115_v20 = vld [vmem:[#allocation7 + $0x68] ss:$12 sps:$4 sm:$0xff]   ;;  %v1100_v22 = vld [vmem:[#allocation7 + $0x4] ss:$12 sps:$4 sm:$0xff]   ;;  %s312_s11 = scalar_lea.vmem [#allocation5], %s311_s0  ;;  %v560_v54 = vpack.c.bf16 %v1442_v23, %v1442_v23  ;;  %v807_v2 = vshrl.u32 %v806_v1, 7 }
  0x55   : > { %483 = vmatprep.subr.bf16.mxu0 %v1085_v7  ;;  %v313_v24 = vld [vmem:[%s312_s11] sm:$0x1]  ;;  %vm316_vm1 = vcmp.eq.s32.totalorder %v315_v19, 1  ;;  %v1119_v25 = vld [vmem:[#allocation7 + $0x50] ss:$12 sps:$4 sm:$0xff]  }
  0x56   : > { %986 = vmatpush3.bf16.msra.mxu1 %v1107_v13  ;;  %v1102_v26 = vld [vmem:[#allocation7] ss:$12 sps:$4 sm:$0xff]   ;;  %v317_v27 = vsel %vm316_vm1, %v313_v24, %v1442_v23  ;;  %v1123_v29 = vld [vmem:[#allocation7 + $0x38] ss:$12 sps:$4 sm:$0xff]   ;;  %v1104_v31 = vld [vmem:[#allocation9 + $0xa8] ss:$12 sps:$4 sm:$0xff]  }
  0x57   : > { %987 = vmatprep.subr.bf16.mxu1 %v1285_v3  ;;  %v1106_v28 = vld [vmem:[#allocation9 + $0xac] ss:$12 sps:$4 sm:$0xff]   ;;  %v318_v30 = vpack.c.bf16 %v317_v27, %v317_v27  ;;  %v1110_v32 = vld [vmem:[#allocation9 + $0x94] ss:$12 sps:$4 sm:$0xff]   ;;  %v1108_v34 = vld [vmem:[#allocation9 + $0x90] ss:$12 sps:$4 sm:$0xff]  }
  0x58   : > { %484 = vmatpush1.bf16.msra.mxu0 %v1087_v8  ;;  %v1127_v33 = vld [vmem:[#allocation7 + $0x20] ss:$12 sps:$4 sm:$0xff]   ;;  %v1114_v35 = vld [vmem:[#allocation9 + $0x7c] ss:$12 sps:$4 sm:$0xff]   ;;  %v1112_v37 = vld [vmem:[#allocation9 + $0x78] ss:$12 sps:$4 sm:$0xff]  }
  0x59   : > { %485 = vmatprep.subr.bf16.mxu0 %v1088_v9  ;;  %v1131_v36 = vld [vmem:[#allocation7 + $0x8] ss:$12 sps:$4 sm:$0xff]   ;;  %v1118_v38 = vld [vmem:[#allocation9 + $0x64] ss:$12 sps:$4 sm:$0xff]   ;;  %v1116_v40 = vld [vmem:[#allocation9 + $0x60] ss:$12 sps:$4 sm:$0xff]  }
  0x5a   : > { %988 = vmatpush3.bf16.msra.mxu1 %v1111_v16  ;;  %v1135_v39 = vld [vmem:[#allocation9 + $0xb0] ss:$12 sps:$4 sm:$0xff]   ;;  %v1122_v41 = vld [vmem:[#allocation9 + $0x4c] ss:$12 sps:$4 sm:$0xff]   ;;  %v1120_v43 = vld [vmem:[#allocation9 + $0x48] ss:$12 sps:$4 sm:$0xff]  }
  0x5b   : > { %989 = vmatprep.subr.bf16.mxu1 %v1285_v3  ;;  %v1136_v42 = vld [vmem:[#allocation9 + $0x98] ss:$12 sps:$4 sm:$0xff]   ;;  %v1126_v44 = vld [vmem:[#allocation9 + $0x34] ss:$12 sps:$4 sm:$0xff]   ;;  %v1124_v46 = vld [vmem:[#allocation9 + $0x30] ss:$12 sps:$4 sm:$0xff]  }
  0x5c   : > { %486 = vmatpush1.bf16.msra.mxu0 %v1090_v10  ;;  %v1137_v45 = vld [vmem:[#allocation9 + $0x80] ss:$12 sps:$4 sm:$0xff]   ;;  %v1130_v47 = vld [vmem:[#allocation9 + $0x1c] ss:$12 sps:$4 sm:$0xff]   ;;  %v1128_v49 = vld [vmem:[#allocation9 + $0x18] ss:$12 sps:$4 sm:$0xff]  }
  0x5d   : > { %487 = vmatprep.subr.bf16.mxu0 %v1091_v12  ;;  %v1138_v48 = vld [vmem:[#allocation9 + $0x68] ss:$12 sps:$4 sm:$0xff]   ;;  %v1134_v50 = vld [vmem:[#allocation9 + $0x4] ss:$12 sps:$4 sm:$0xff]   ;;  %v1132_v52 = vld [vmem:[#allocation9] ss:$12 sps:$4 sm:$0xff]  }
  0x5e   : > { %990 = vmatpush3.bf16.msra.mxu1 %v1115_v20  ;;  %v1139_v51 = vld [vmem:[#allocation9 + $0x50] ss:$12 sps:$4 sm:$0xff]   ;;  %v1140_v53 = vld [vmem:[#allocation9 + $0x38] ss:$12 sps:$4 sm:$0xff]   ;;  %v1141_v55 = vld [vmem:[#allocation9 + $0x20] ss:$12 sps:$4 sm:$0xff]  }
  0x5f   : > { %991 = vmatprep.subr.bf16.mxu1 %v1285_v3  ;;  %v1142_v56 = vld [vmem:[#allocation9 + $0x8] ss:$12 sps:$4 sm:$0xff]   ;;  %v804_v5 = vld [vmem:[%s1480_s5] sm:$0x3]  ;;  %v812_v8 = vsub.s32 1, %v807_v2 }
  0x60   : > { %488 = vmatpush1.bf16.msra.mxu0 %v1093_v14 }
  0x61   : > { %489 = vmatprep.subr.bf16.mxu0 %v1094_v15  ;;  %v813_v14 = vrot.slane %v804_v5, %v812_v8 }
  0x62   : > { %992 = vmatpush3.bf16.msra.mxu1 %v1119_v25 }
  0x63   : > { %993 = vmatprep.subr.bf16.mxu1 %v1285_v3 }
  0x64   : > { %490 = vmatpush1.bf16.msra.mxu0 %v1096_v17 }
  0x65   : > { %491 = vmatprep.subr.bf16.mxu0 %v1097_v18 }
  0x66   : > { %994 = vmatpush3.bf16.msra.mxu1 %v1123_v29  ;;  %v830_v29 = vld [vmem:[%s1481_s6] sm:$0x1] }
  0x67   : > { %995 = vmatprep.subr.bf16.mxu1 %v1285_v3 }
  0x68   : > { %492 = vmatpush1.bf16.msra.mxu0 %v1099_v21 }
  0x69   : > { %493 = vmatprep.subr.bf16.mxu0 %v1100_v22 }
  0x6a   : > { %996 = vmatpush3.bf16.msra.mxu1 %v1127_v33 }
  0x6b   : > { %997 = vmatprep.subr.bf16.mxu1 %v1285_v3 }
  0x6c   : > { %494 = vmatpush1.bf16.msra.mxu0 %v1102_v26  ;;  %v832_v26 = vld [vmem:[#allocation10] sm:$0x1] }
  0x6d   : > { %721 = vmatprep.subr.bf16.mxu0 %v1106_v28 }
  0x6e   : > { %998 = vmatpush3.bf16.msra.mxu1 %v1131_v36 }
  0x6f   : > { %512 = vmatmul.mubr.bf16.vlgmr.msra.gmra.mxu0 %v318_v30  ;;  %1003 = vmatprep.subr.bf16.mxu1 %v1285_v3 }
  0x70   : > { %722 = vmatpush1.bf16.msra.mxu0 %v1104_v31  ;;  %753 = vmatprep.mubr.bf16.mxu0 %v1286_v4  ;;  %v808_v4 = vsub.s32 0, %v807_v2 }
  0x71   : > { %723 = vmatprep.subr.bf16.mxu0 %v1110_v32  ;;  %1000 = vmatmul.mubr.bf16.vlgmr.msra.gmra.mxu1 %v318_v30 }
  0x72   : > { %1004 = vmatpush3.bf16.msra.mxu1 %v1135_v39  ;;  %1019 = vmatprep.mubr.msk.bf16.mxu1 %vm1287_vm0, %v1285_v3  ;;  %v809_v6 = vrot.slane %v804_v5, %v808_v4 }
  0x73   : > { %1005 = vmatprep.subr.bf16.mxu1 %v1285_v3 }
  0x74   : > { %724 = vmatpush1.bf16.msra.mxu0 %v1108_v34 }
  0x75   : > { %725 = vmatprep.subr.bf16.mxu0 %v1114_v35 }
  0x76   : > { %1006 = vmatpush3.bf16.msra.mxu1 %v1136_v42 }
  0x77   : > { %1007 = vmatprep.subr.bf16.mxu1 %v1285_v3 }
  0x78   : > { %726 = vmatpush1.bf16.msra.mxu0 %v1112_v37 }
  0x79   : > { %727 = vmatprep.subr.bf16.mxu0 %v1118_v38 }
  0x7a   : > { %1008 = vmatpush3.bf16.msra.mxu1 %v1137_v45 }
  0x7b   : > { %1009 = vmatprep.subr.bf16.mxu1 %v1285_v3 }
  0x7c   : > { %728 = vmatpush1.bf16.msra.mxu0 %v1116_v40 }
  0x7d   : > { %729 = vmatprep.subr.bf16.mxu0 %v1122_v41 }
  0x7e   : > { %1010 = vmatpush3.bf16.msra.mxu1 %v1138_v48 }
  0x7f   : > { %1011 = vmatprep.subr.bf16.mxu1 %v1285_v3 }
  0x80   : > { %730 = vmatpush1.bf16.msra.mxu0 %v1120_v43 }
  0x81   : > { %731 = vmatprep.subr.bf16.mxu0 %v1126_v44 }
  0x82   : > { %1012 = vmatpush3.bf16.msra.mxu1 %v1139_v51 }
  0x83   : > { %1013 = vmatprep.subr.bf16.mxu1 %v1285_v3 }
  0x84   : > { %732 = vmatpush1.bf16.msra.mxu0 %v1124_v46 }
  0x85   : > { %733 = vmatprep.subr.bf16.mxu0 %v1130_v47 }
  0x86   : > { %1014 = vmatpush3.bf16.msra.mxu1 %v1140_v53 }
  0x87   : > { %1015 = vmatprep.subr.bf16.mxu1 %v1285_v3 }
  0x88   : > { %734 = vmatpush1.bf16.msra.mxu0 %v1128_v49 }
  0x89   : > { %735 = vmatprep.subr.bf16.mxu0 %v1134_v50 }
  0x8a   : > { %1016 = vmatpush3.bf16.msra.mxu1 %v1141_v55 }
  0x8b   : > { %1017 = vmatprep.subr.bf16.mxu1 %v1285_v3 }
  0x8c   : > { %736 = vmatpush1.bf16.msra.mxu0 %v1132_v52 }
  0x8e   : > { %1018 = vmatpush3.bf16.msra.mxu1 %v1142_v56 }
  0x8f   : > { %754 = vmatmul.mubr.bf16.vlgmr.msra.gmra.mxu0 %v560_v54 }
  0x91   : > { %1020 = vmatmul.mubr.bf16.vlgmr.msra.gmra.mxu1 %v560_v54 }
 0x12f   : > { %v513_v57 = vpop.f32.mrf.mxu0 }
 0x131   : > { %v515_v58 = vpop.f32.mrf.mxu0  ;;  %v554_v61 = vpop.f32.mrf.mxu1 }
 0x132   : > { %v831_v31 = vadd.f32 %v830_v29, %v554_v61 }
 0x133   : > { %v517_v59 = vpop.f32.mrf.mxu0  ;;  %v1001_v62 = vpop.f32.mrf.mxu1 }
 0x135   : > { %v518_v60 = vpop.f32.mrf.mxu0  ;;  %v557_v63 = vpop.f32.mrf.mxu1 }
 0x137   : > { %v1002_v0 = vpop.f32.mrf.mxu1 }
 0x14f   : > { %v755_v7 = vpop.f32.mrf.mxu0 }
 0x150   : > { %v802_v3 = vadd.f32 %v755_v7, %v513_v57 }
 0x151   : > { %v757_v9 = vpop.f32.mrf.mxu0  ;;  %v796_v17 = vpop.f32.mrf.mxu1 }
 0x152   : > { %v816_v10 = vadd.f32 %v809_v6, %v802_v3  ;;  %v803_v13 = vadd.f32 %v757_v9, %v515_v58  ;;  %v833_v28 = vadd.f32 %v832_v26, %v796_v17 }
 0x153   : > { %v759_v11 = vpop.f32.mrf.mxu0  ;;  %v1021_v18 = vpop.f32.mrf.mxu1 }
 0x154   : > { %v961_v12 = vmul.f32 -1.442695, %v816_v10  ;;  %v817_v16 = vadd.f32 %v813_v14, %v803_v13 }
 0x155   : > { %v760_v15 = vpop.f32.mrf.mxu0  ;;  %v799_v20 = vpop.f32.mrf.mxu1 }
 0x156   : > { %1143 = vpow2.f32 %v961_v12  ;;  %v962_v19 = vmul.f32 -1.442695, %v817_v16 }
 0x157   : > { %v1022_v21 = vpop.f32.mrf.mxu1 }
 0x158   : > { %1145 = vpow2.f32 %v962_v19 }
 0x163   : > { %v1144_v22 = vpop.eup %1143 }
 0x164   : > { %v824_v24 = vadd.f32 1.0, %v1144_v22 }
 0x165   : > { %v1146_v25 = vpop.eup %1145 }
 0x166   : > { %1147 = vrcp.f32 %v824_v24  ;;  %v825_v27 = vadd.f32 1.0, %v1146_v25 }
 0x168   : > { %1149 = vrcp.f32 %v825_v27 }
 0x173   : > { %v1148_v30 = vpop.eup %1147 }
 0x174   : > { %v834_v32 = vmul.f32 %v1148_v30, %v833_v28 }
 0x175   : > { %v1150_v34 = vpop.eup %1149 }
 0x176   : > { %v835_v33 = vadd.f32 %v834_v32, %v831_v31  ;;  %v837_v35 = vsub.f32 1.0, %v1150_v34  ;;  %v839_v37 = vmul.f32 %v1150_v34, %v1442_v23 }
 0x178   : > { %1151 = vtanh.f32 %v835_v33 }
 0x185   : > { %v1152_v36 = vpop.eup %1151 }
 0x186   : > { %v838_v38 = vmul.f32 %v1152_v36, %v837_v35 }
 0x188   : > { %v840_v39 = vadd.f32 %v839_v37, %v838_v38 }
 0x18a   : > { %841 = vst [vmem:[#allocation2] sm:$0x1] %v840_v39  ;;  %842 = vst [vmem:[%s1483_s8] sm:$0x1] %v840_v39 }
 0x18b PF: > { %s22_s29 = sadd.s32 1, %s1275_s29  }
 0x18c   : > { %p19_p2 = scmp.ge.s32.totalorder %s22_s29, 4  }
 0x18e   :  { %21 = sbr.rel (!%p19_p2) target bundleno = 5 (0x5), region = 93 }
 0x193   :  { %854 = vsyncpa [#allocation6], 1 }
 0x194   :  { %856 = vsyncpa [#allocation6 + $0x1], 1 }
 0x195   :  { %857 = vsyncpa [#allocation8], 1 }
 0x196   :  { %858 = vsyncpa [#allocation11], 1 }

</bundles_post_ra>
